<compile_context>
chip_gen: v7x
topology: tpu7x:2x2x1
jax: 0.10.0
libtpu: 0.0.40
codegen_flags: <defaults>
</compile_context>

<pallas_src>
import math
import functools

import jax
import jax.numpy as jnp
from jax.experimental import pallas as pl
from jax.experimental.pallas import tpu as pltpu


def _round_up(x, m):
    return -(-x // m) * m


def _device_caps():
    """Best-effort (physical VMEM bytes, #TensorCores per chip) for the local device."""
    vmem = None
    num_tc = 1
    try:
        vmem = int(pltpu.get_tpu_info().vmem_capacity_bytes)
    except Exception:
        vmem = None
    kind = ""
    try:
        kind = jax.devices()[0].device_kind.lower()
    except Exception:
        pass
    if "v7" in kind:
        num_tc = 2
        if vmem is None:
            vmem = 64 << 20
    if vmem is None:
        vmem = 64 << 20   # conservative fallback (covers v7x's 64 MiB)
    return vmem, num_tc


def _mha_kernel(ref_ref, gst_ref, wq_ref, wkv_ref, wo_ref, bqo_ref, bkv_ref,
                hmap_ref, hmapt_ref, out_ref, *, n_feat, n_head, tk, tk_pad, scale):
    """One tile of TILE_B batch elements per grid step.

    ref_ref  : (TILE_B, q_dim)          query rows (compute dtype)
    gst_ref  : (TILE_B*tk_pad, kv_dim)  flattened style tokens (compute dtype)
    wq_ref   : (q_dim, n_feat)          Wq^T
    wkv_ref  : (kv_dim, 2*n_feat)       [Wk^T | Wv^T]
    wo_ref   : (n_feat, n_feat)         Wo^T
    bqo_ref  : (2, n_feat)  f32         row 0 = bq, row 1 = bo
    bkv_ref  : (1, 2*n_feat) f32        [bk | bv]
    hmap_ref : (n_feat, n_head) f32     one-hot head membership
    hmapt_ref: (n_head, n_feat) f32     its transpose
    out_ref  : (TILE_B, n_feat)
    """
    tb = out_ref.shape[0]            # TILE_B
    rows = gst_ref.shape[0]          # TILE_B * tk_pad
    f32 = jnp.float32

    # Q projection at batch-row granularity; scale applied in f32 (not folded into weights).
    q = (jnp.dot(ref_ref[...], wq_ref[...], preferred_element_type=f32)
         + bqo_ref[0:1, :]) * f32(scale)                                  # (tb, n_feat)

    # Fused K/V projection: one (rows, kv_dim) @ (kv_dim, 2*n_feat) matmul, f32 accumulation.
    kv = jnp.dot(gst_ref[...], wkv_ref[...], preferred_element_type=f32) + bkv_ref[...]
    k = kv[:, :n_feat]               # (rows, n_feat)
    v = kv[:, n_feat:]               # (rows, n_feat)

    # Broadcast q to token rows in VMEM (sublane broadcast; rows = tb * tk_pad, tk_pad % 8 == 0).
    qb = jnp.broadcast_to(q.reshape(tb, 1, n_feat),
                          (tb, tk_pad, n_feat)).reshape(rows, n_feat)

    # Per-head scores: block-diagonal q.k reduction via the one-hot head map.
    scores = jnp.dot(qb * k, hmap_ref[...], preferred_element_type=f32)   # (rows, n_head)

    # Segmented softmax over each batch element's tk tokens (f32 throughout).
    s3 = scores.reshape(tb, tk_pad, n_head)
    if tk_pad != tk:                                                      # mask padded token rows
        tok = jax.lax.broadcasted_iota(jnp.int32, (tb, tk_pad, n_head), 1)
        s3 = jnp.where(tok < tk, s3, f32(-1e30))
    smax = jnp.max(s3, axis=1, keepdims=True)                             # (tb, 1, h)
    p3 = jnp.exp(s3 - smax)
    p3 = p3 / jnp.sum(p3, axis=1, keepdims=True)
    # TODO(synk): torch.nn.Dropout on attention weights omitted (dropout_rate=0.0 -> identity).
    p = p3.reshape(rows, n_head)

    # o[b, f] = sum_t p[b, t, head(f)] * v[b, t, f]
    p_full = jnp.dot(p, hmapt_ref[...], preferred_element_type=f32)       # (rows, n_feat)
    o = jnp.sum((p_full * v).reshape(tb, tk_pad, n_feat), axis=1)         # (tb, n_feat)

    # Output projection; feature order is head-major (h, d_k), matching PyTorch's
    # transpose(-1,-2).view(B, 1, -1) for Tq == 1.
    out = jnp.dot(o.astype(wo_ref.dtype), wo_ref[...],
                  preferred_element_type=f32) + bqo_ref[1:2, :]
    out_ref[...] = out.astype(out_ref.dtype)


def multi_headed_attention_pallas(ref_emb, gst_emb, params, n_head, *,
                                  tile_b=1024, compute_dtype=jnp.bfloat16):
    """Pallas implementation of MultiHeadedAttention.forward.

    compute_dtype: matmul-input dtype (default bf16 -- halves HBM read traffic). Softmax,
    biases, and all matmul accumulations stay in float32 regardless. Pass jnp.float32 for a
    bit-accurate (to f32 rounding) path.
    """
    B, Tq, q_dim = ref_emb.shape
    assert Tq == 1, "module semantics (view(B,1,-1)) require a single query position"
    Bg, Tk, kv_dim = gst_emb.shape
    assert Bg == B
    n_feat = params["wq"].shape[0]
    assert n_feat % n_head == 0
    d_k = n_feat // n_head
    scale = 1.0 / math.sqrt(d_k * n_head)

    out_dtype = ref_emb.dtype
    mat_dtype = jnp.dtype(compute_dtype) if compute_dtype is not None else jnp.dtype(out_dtype)
    f32 = jnp.float32
    mat_isz = mat_dtype.itemsize
    out_isz = jnp.dtype(out_dtype).itemsize

    # ---- device caps + tile geometry --------------------------------------------------
    vmem_bytes, num_tc = _device_caps()
    vmem_limit = max(32 << 20, int(vmem_bytes * 0.75))     # explicit scoped-VMEM ceiling

    Tk_pad = _round_up(Tk, 8)                              # align token groups to 8 sublanes
    sub = 8 if mat_isz >= 4 else 16                        # sublane rounding for tiled blocks

    # Rough per-batch-row VMEM footprint (double-buffered inputs/outputs + f32 temps, with
    # lane padding to 128 for narrow arrays), used to cap TILE_B inside the VMEM budget.
    lane = 128
    nf_l = _round_up(n_feat, lane)
    per_row = (
        2 * _round_up(q_dim, lane) * mat_isz
        + 2 * Tk_pad * _round_up(kv_dim, lane) * mat_isz
        + 2 * nf_l * out_isz
        + (Tk_pad * (4 * nf_l + _round_up(n_head, lane)) + 2 * nf_l) * 4
    )
    fixed = 2 * (q_dim + 2 * kv_dim + n_feat + n_head + 16) * nf_l * 4 + (2 << 20)
    budget = int(vmem_limit * 0.6)
    cap_rows = max(sub, (max(0, budget - fixed) // per_row) // sub * sub)

    if B <= tile_b and B <= cap_rows and (num_tc == 1 or B < 16):
        TILE_B = B                                  # single tile; block == full array dims
    else:
        want = min(tile_b, cap_rows)
        if num_tc > 1:
            # split the single 'parallel' grid axis so every TensorCore gets work (v7x)
            want = min(want, _round_up(-(-B // num_tc), sub))
        TILE_B = max(sub, (want // sub) * sub)
    num_tiles = -(-B // TILE_B)
    B_pad = num_tiles * TILE_B
    rows_blk = TILE_B * Tk_pad

    # ---- parameter packing (one-time, outside the kernel) -----------------------------
    wq_t = params["wq"].T.astype(mat_dtype)                                          # (q_dim, n_feat)
    wkv = jnp.concatenate([params["wk"].T, params["wv"].T], axis=1).astype(mat_dtype)  # (kv_dim, 2nf)
    wo_t = params["wo"].T.astype(mat_dtype)                                          # (n_feat, n_feat)
    bqo = jnp.stack([params["bq"].astype(f32), params["bo"].astype(f32)], axis=0)    # (2, n_feat)
    bkv = jnp.concatenate([params["bk"], params["bv"]]).astype(f32).reshape(1, 2 * n_feat)
    heads = jnp.arange(n_feat, dtype=jnp.int32) // d_k
    hmap = (heads[:, None] == jnp.arange(n_head, dtype=jnp.int32)[None, :]).astype(f32)  # (nf, h)
    hmap_t = hmap.T                                                                   # (h, nf)

    # ---- input flattening / padding (XLA-side; no Tk-fold query expansion) ------------
    ref_flat = ref_emb.reshape(B, q_dim)
    gst3 = gst_emb
    if B_pad != B:
        ref_flat = jnp.pad(ref_flat, ((0, B_pad - B), (0, 0)))
        gst3 = jnp.pad(gst3, ((0, B_pad - B), (0, 0), (0, 0)))
    if Tk_pad != Tk:
        gst3 = jnp.pad(gst3, ((0, 0), (0, Tk_pad - Tk), (0, 0)))
    ref_flat = ref_flat.astype(mat_dtype)
    gst_flat = gst3.reshape(B_pad * Tk_pad, kv_dim).astype(mat_dtype)

    # ---- advisory cost estimate for the XLA scheduler ---------------------------------
    flops = (2 * B_pad * q_dim * n_feat                    # Q projection (per batch row)
             + 2 * B_pad * Tk_pad * kv_dim * 2 * n_feat    # fused K/V projection
             + 2 * B_pad * Tk_pad * n_feat * n_head        # scores
             + 2 * B_pad * Tk_pad * n_head * n_feat        # prob expansion
             + 2 * B_pad * Tk_pad * n_feat                 # weighted value sum
             + 2 * B_pad * n_feat * n_feat)                # output projection
    bytes_accessed = (ref_flat.size * mat_isz + gst_flat.size * mat_isz
                      + (wq_t.size + wkv.size + wo_t.size) * mat_isz
                      + (bqo.size + bkv.size + hmap.size + hmap_t.size) * 4
                      + B_pad * n_feat * out_isz)
    cost = pl.CostEstimate(flops=int(flops),
                           transcendentals=int(B_pad * Tk_pad * n_head),
                           bytes_accessed=int(bytes_accessed))

    kernel = functools.partial(_mha_kernel, n_feat=n_feat, n_head=n_head,
                               tk=Tk, tk_pad=Tk_pad, scale=scale)

    out2d = pl.pallas_call(
        kernel,
        out_shape=jax.ShapeDtypeStruct((B_pad, n_feat), out_dtype),
        grid_spec=pltpu.PrefetchScalarGridSpec(
            num_scalar_prefetch=0,
            grid=(num_tiles,),
            in_specs=[
                pl.BlockSpec((TILE_B, q_dim), lambda i: (i, 0)),          # ref (batch rows)
                pl.BlockSpec((rows_blk, kv_dim), lambda i: (i, 0)),       # gst (flattened)
                pl.BlockSpec((q_dim, n_feat), lambda i: (0, 0)),          # Wq^T
                pl.BlockSpec((kv_dim, 2 * n_feat), lambda i: (0, 0)),     # [Wk^T | Wv^T]
                pl.BlockSpec((n_feat, n_feat), lambda i: (0, 0)),         # Wo^T
                pl.BlockSpec((2, n_feat), lambda i: (0, 0)),              # [bq; bo]
                pl.BlockSpec((1, 2 * n_feat), lambda i: (0, 0)),          # [bk | bv]
                pl.BlockSpec((n_feat, n_head), lambda i: (0, 0)),         # head map
                pl.BlockSpec((n_head, n_feat), lambda i: (0, 0)),         # head map^T
            ],
            out_specs=pl.BlockSpec((TILE_B, n_feat), lambda i: (i, 0)),
        ),
        compiler_params=pltpu.CompilerParams(
            dimension_semantics=("parallel",),
            vmem_limit_bytes=int(vmem_limit)),
        cost_estimate=cost,
    )(ref_flat, gst_flat, wq_t, wkv, wo_t, bqo, bkv, hmap, hmap_t)

    return out2d[:B].reshape(B, 1, n_feat)


def reference_forward(ref_emb, gst_emb, params, n_head):
    """Pure-JAX transcription of the PyTorch forward (for verification)."""
    B = ref_emb.shape[0]
    n_feat = params["wq"].shape[0]
    d_k = n_feat // n_head
    q = ref_emb @ params["wq"].T + params["bq"]
    k = gst_emb @ params["wk"].T + params["bk"]
    v = gst_emb @ params["wv"].T + params["bv"]
    q = q.reshape(B, -1, n_head, d_k).transpose(0, 2, 1, 3)
    k = k.reshape(B, -1, n_head, d_k).transpose(0, 2, 1, 3)
    v = v.reshape(B, -1, n_head, d_k).transpose(0, 2, 1, 3)
    score = (q @ jnp.swapaxes(k, -1, -2)) / math.sqrt(d_k * n_head)
    score = jax.nn.softmax(score, axis=-1)
    o = score @ v
    o = jnp.swapaxes(o, -1, -2).reshape(B, 1, -1)
    return o @ params["wo"].T + params["bo"]


if __name__ == "__main__":
    B, Tk = 2, 8
    q_dim, kv_dim = 48, 32       # "different input dimension" for q vs k/v
    n_head, n_feat = 4, 32       # d_k = 8

    key = jax.random.PRNGKey(0)
    keys = jax.random.split(key, 10)

    def linear_init(kw, kb, out_d, in_d):
        # Deterministic PyTorch-style Linear init: U(-1/sqrt(in), 1/sqrt(in)).
        bound = 1.0 / math.sqrt(in_d)
        w = jax.random.uniform(kw, (out_d, in_d), jnp.float32, -bound, bound)
        b = jax.random.uniform(kb, (out_d,), jnp.float32, -bound, bound)
        return w, b

    wq, bq = linear_init(keys[0], keys[1], n_feat, q_dim)
    wk, bk = linear_init(keys[2], keys[3], n_feat, kv_dim)
    wv, bv = linear_init(keys[4], keys[5], n_feat, kv_dim)
    wo, bo = linear_init(keys[6], keys[7], n_feat, n_feat)
    params = dict(wq=wq, bq=bq, wk=wk, bk=bk, wv=wv, bv=bv, wo=wo, bo=bo)

    ref_emb = jax.random.normal(keys[8], (B, 1, q_dim), jnp.float32)
    gst_emb = jax.random.normal(keys[9], (B, Tk, kv_dim), jnp.float32)

    expected = reference_forward(ref_emb, gst_emb, params, n_head)

    # Exact path (f32 matmul inputs): tight tolerance against the pure-JAX reference.
    out_f32 = multi_headed_attention_pallas(ref_emb, gst_emb, params, n_head,
                                            compute_dtype=jnp.float32)
    out_f32 = jax.block_until_ready(out_f32)
    assert out_f32.shape == (B, 1, n_feat), out_f32.shape
    assert jnp.allclose(out_f32, expected, atol=1e-5, rtol=1e-5), \
        f"f32 path: max abs err = {jnp.max(jnp.abs(out_f32 - expected))}"

    # Default fast path (bf16 matmul inputs, f32 accumulation/softmax): loose tolerance.
    out_bf16 = multi_headed_attention_pallas(ref_emb, gst_emb, params, n_head)
    out_bf16 = jax.block_until_ready(out_bf16)
    err = jnp.max(jnp.abs(out_bf16.astype(jnp.float32) - expected))
    assert jnp.allclose(out_bf16.astype(jnp.float32), expected, atol=5e-2, rtol=5e-2), \
        f"bf16 path: max abs err = {err}"

    print("KERNEL_OK")
</pallas_src>

<mosaic_0001>
module attributes {stable_mosaic.version = 11 : i64} {
  func.func @_mha_kernel(%arg0: i32, %arg1: memref<2x48xf32, #tpu.memory_space<vmem>>, %arg2: memref<16x32xf32, #tpu.memory_space<vmem>>, %arg3: memref<48x32xf32, #tpu.memory_space<vmem>>, %arg4: memref<32x64xf32, #tpu.memory_space<vmem>>, %arg5: memref<32x32xf32, #tpu.memory_space<vmem>>, %arg6: memref<2x32xf32, #tpu.memory_space<vmem>>, %arg7: memref<1x64xf32, #tpu.memory_space<vmem>>, %arg8: memref<32x4xf32, #tpu.memory_space<vmem>>, %arg9: memref<4x32xf32, #tpu.memory_space<vmem>>, %arg10: memref<2x32xf32, #tpu.memory_space<vmem>>) attributes {dimension_semantics = [#tpu.dimension_semantics<parallel>], iteration_bounds = array<i64: 1>, scalar_prefetch = 0 : i64, scratch_operands = 0 : i64, tpu.core_type = #tpu.core_type<tc>, window_params = [{transform_indices = @transform_0, window_bounds = array<i64: 2, 48>}, {transform_indices = @transform_1, window_bounds = array<i64: 16, 32>}, {pipeline_mode = #tpu.pipeline_mode<synchronous>, transform_indices = @transform_2, window_bounds = array<i64: 48, 32>}, {pipeline_mode = #tpu.pipeline_mode<synchronous>, transform_indices = @transform_3, window_bounds = array<i64: 32, 64>}, {pipeline_mode = #tpu.pipeline_mode<synchronous>, transform_indices = @transform_4, window_bounds = array<i64: 32, 32>}, {pipeline_mode = #tpu.pipeline_mode<synchronous>, transform_indices = @transform_5, window_bounds = array<i64: 2, 32>}, {pipeline_mode = #tpu.pipeline_mode<synchronous>, transform_indices = @transform_6, window_bounds = array<i64: 1, 64>}, {pipeline_mode = #tpu.pipeline_mode<synchronous>, transform_indices = @transform_7, window_bounds = array<i64: 32, 4>}, {pipeline_mode = #tpu.pipeline_mode<synchronous>, transform_indices = @transform_8, window_bounds = array<i64: 4, 32>}, {transform_indices = @transform_9, window_bounds = array<i64: 2, 32>}]} {
    %c0 = arith.constant 0 : index
    %c0_0 = arith.constant 0 : index
    %0 = vector.load %arg1[%c0, %c0_0] : memref<2x48xf32, #tpu.memory_space<vmem>>, vector<2x48xf32>
    %c0_1 = arith.constant 0 : index
    %c0_2 = arith.constant 0 : index
    %1 = vector.load %arg3[%c0_1, %c0_2] : memref<48x32xf32, #tpu.memory_space<vmem>>, vector<48x32xf32>
    %cst = arith.constant dense<0.000000e+00> : vector<2x32xf32>
    %2 = tpu.matmul %0, %1, %cst {dimension_numbers = #tpu.dot_dimension_numbers<[1], [0], [0], [1], [0, 0, 1, 1], [], []>} : vector<2x48xf32>, vector<48x32xf32>, vector<2x32xf32> -> vector<2x32xf32>
    %c0_3 = arith.constant 0 : index
    %c0_4 = arith.constant 0 : index
    %3 = vector.load %arg6[%c0_3, %c0_4] : memref<2x32xf32, #tpu.memory_space<vmem>>, vector<1x32xf32>
    %4 = vector.broadcast %3 : vector<1x32xf32> to vector<2x32xf32>
    %5 = arith.addf %2, %4 : vector<2x32xf32>
    %cst_5 = arith.constant 0.176776692 : f32
    %6 = vector.broadcast %cst_5 : f32 to vector<2x32xf32>
    %7 = arith.mulf %5, %6 : vector<2x32xf32>
    %c0_6 = arith.constant 0 : index
    %c0_7 = arith.constant 0 : index
    %8 = vector.load %arg2[%c0_6, %c0_7] : memref<16x32xf32, #tpu.memory_space<vmem>>, vector<16x32xf32>
    %c0_8 = arith.constant 0 : index
    %c0_9 = arith.constant 0 : index
    %9 = vector.load %arg4[%c0_8, %c0_9] : memref<32x64xf32, #tpu.memory_space<vmem>>, vector<32x64xf32>
    %cst_10 = arith.constant dense<0.000000e+00> : vector<16x64xf32>
    %10 = tpu.matmul %8, %9, %cst_10 {dimension_numbers = #tpu.dot_dimension_numbers<[1], [0], [0], [1], [0, 0, 1, 1], [], []>} : vector<16x32xf32>, vector<32x64xf32>, vector<16x64xf32> -> vector<16x64xf32>
    %c0_11 = arith.constant 0 : index
    %c0_12 = arith.constant 0 : index
    %11 = vector.load %arg7[%c0_11, %c0_12] : memref<1x64xf32, #tpu.memory_space<vmem>>, vector<1x64xf32>
    %12 = vector.broadcast %11 : vector<1x64xf32> to vector<16x64xf32>
    %13 = arith.addf %10, %12 : vector<16x64xf32>
    %14 = vector.extract_strided_slice %13 {offsets = [0, 0], sizes = [16, 32], strides = [1, 1]} : vector<16x64xf32> to vector<16x32xf32>
    %15 = vector.extract_strided_slice %13 {offsets = [0, 32], sizes = [16, 32], strides = [1, 1]} : vector<16x64xf32> to vector<16x32xf32>
    %16 = vector.shape_cast %7 : vector<2x32xf32> to vector<2x1x32xf32>
    %17 = vector.shape_cast %16 : vector<2x1x32xf32> to vector<2x1x32xf32>
    %18 = vector.broadcast %17 : vector<2x1x32xf32> to vector<2x8x32xf32>
    %19 = vector.shape_cast %18 : vector<2x8x32xf32> to vector<16x32xf32>
    %20 = arith.mulf %19, %14 : vector<16x32xf32>
    %c0_13 = arith.constant 0 : index
    %c0_14 = arith.constant 0 : index
    %21 = vector.load %arg8[%c0_13, %c0_14] : memref<32x4xf32, #tpu.memory_space<vmem>>, vector<32x4xf32>
    %cst_15 = arith.constant dense<0.000000e+00> : vector<16x4xf32>
    %22 = tpu.matmul %20, %21, %cst_15 {dimension_numbers = #tpu.dot_dimension_numbers<[1], [0], [0], [1], [0, 0, 1, 1], [], []>} : vector<16x32xf32>, vector<32x4xf32>, vector<16x4xf32> -> vector<16x4xf32>
    %23 = vector.shape_cast %22 : vector<16x4xf32> to vector<2x8x4xf32>
    %cst_16 = arith.constant dense<0xFF800000> : vector<2x4xf32>
    %24 = vector.multi_reduction <maximumf>, %23, %cst_16 [1] : vector<2x8x4xf32> to vector<2x4xf32>
    %25 = vector.shape_cast %24 : vector<2x4xf32> to vector<2x1x4xf32>
    %26 = vector.broadcast %25 : vector<2x1x4xf32> to vector<2x8x4xf32>
    %27 = arith.subf %23, %26 : vector<2x8x4xf32>
    %28 = math.exp %27 : vector<2x8x4xf32>
    %cst_17 = arith.constant dense<0.000000e+00> : vector<2x4xf32>
    %29 = vector.multi_reduction <add>, %28, %cst_17 [1] : vector<2x8x4xf32> to vector<2x4xf32>
    %30 = vector.shape_cast %29 : vector<2x4xf32> to vector<2x1x4xf32>
    %31 = vector.broadcast %30 : vector<2x1x4xf32> to vector<2x8x4xf32>
    %32 = arith.divf %28, %31 : vector<2x8x4xf32>
    %33 = vector.shape_cast %32 : vector<2x8x4xf32> to vector<16x4xf32>
    %c0_18 = arith.constant 0 : index
    %c0_19 = arith.constant 0 : index
    %34 = vector.load %arg9[%c0_18, %c0_19] : memref<4x32xf32, #tpu.memory_space<vmem>>, vector<4x32xf32>
    %cst_20 = arith.constant dense<0.000000e+00> : vector<16x32xf32>
    %35 = tpu.matmul %33, %34, %cst_20 {dimension_numbers = #tpu.dot_dimension_numbers<[1], [0], [0], [1], [0, 0, 1, 1], [], []>} : vector<16x4xf32>, vector<4x32xf32>, vector<16x32xf32> -> vector<16x32xf32>
    %36 = arith.mulf %35, %15 : vector<16x32xf32>
    %37 = vector.shape_cast %36 : vector<16x32xf32> to vector<2x8x32xf32>
    %cst_21 = arith.constant dense<0.000000e+00> : vector<2x32xf32>
    %38 = vector.multi_reduction <add>, %37, %cst_21 [1] : vector<2x8x32xf32> to vector<2x32xf32>
    %c0_22 = arith.constant 0 : index
    %c0_23 = arith.constant 0 : index
    %39 = vector.load %arg5[%c0_22, %c0_23] : memref<32x32xf32, #tpu.memory_space<vmem>>, vector<32x32xf32>
    %cst_24 = arith.constant dense<0.000000e+00> : vector<2x32xf32>
    %40 = tpu.matmul %38, %39, %cst_24 {dimension_numbers = #tpu.dot_dimension_numbers<[1], [0], [0], [1], [0, 0, 1, 1], [], []>} : vector<2x32xf32>, vector<32x32xf32>, vector<2x32xf32> -> vector<2x32xf32>
    %c1 = arith.constant 1 : index
    %c0_25 = arith.constant 0 : index
    %41 = vector.load %arg6[%c1, %c0_25] : memref<2x32xf32, #tpu.memory_space<vmem>>, vector<1x32xf32>
    %42 = vector.broadcast %41 : vector<1x32xf32> to vector<2x32xf32>
    %43 = arith.addf %40, %42 : vector<2x32xf32>
    %c0_26 = arith.constant 0 : index
    %c0_27 = arith.constant 0 : index
    %44 = vector.load %arg10[%c0_26, %c0_27] : memref<2x32xf32, #tpu.memory_space<vmem>>, vector<2x32xf32>
    tpu.vector_store %arg10[%c0_26, %c0_27], %43 {strides = array<i32>} : memref<2x32xf32, #tpu.memory_space<vmem>>, vector<2x32xf32>,
    return
  }
  func.func @transform_0(%arg0: i32) -> (i32, i32) {
    %c0_i32 = arith.constant 0 : i32
    %c0_i32_0 = arith.constant 0 : i32
    return %arg0, %c0_i32 : i32, i32
  }
  func.func @transform_1(%arg0: i32) -> (i32, i32) {
    %c0_i32 = arith.constant 0 : i32
    %c0_i32_0 = arith.constant 0 : i32
    return %arg0, %c0_i32 : i32, i32
  }
  func.func @transform_2(%arg0: i32) -> (i32, i32) {
    %c0_i32 = arith.constant 0 : i32
    %c0_i32_0 = arith.constant 0 : i32
    %c0_i32_1 = arith.constant 0 : i32
    return %c0_i32, %c0_i32_0 : i32, i32
  }
  func.func @transform_3(%arg0: i32) -> (i32, i32) {
    %c0_i32 = arith.constant 0 : i32
    %c0_i32_0 = arith.constant 0 : i32
    %c0_i32_1 = arith.constant 0 : i32
    return %c0_i32, %c0_i32_0 : i32, i32
  }
  func.func @transform_4(%arg0: i32) -> (i32, i32) {
    %c0_i32 = arith.constant 0 : i32
    %c0_i32_0 = arith.constant 0 : i32
    %c0_i32_1 = arith.constant 0 : i32
    return %c0_i32, %c0_i32_0 : i32, i32
  }
  func.func @transform_5(%arg0: i32) -> (i32, i32) {
    %c0_i32 = arith.constant 0 : i32
    %c0_i32_0 = arith.constant 0 : i32
    %c0_i32_1 = arith.constant 0 : i32
    return %c0_i32, %c0_i32_0 : i32, i32
  }
  func.func @transform_6(%arg0: i32) -> (i32, i32) {
    %c0_i32 = arith.constant 0 : i32
    %c0_i32_0 = arith.constant 0 : i32
    %c0_i32_1 = arith.constant 0 : i32
    return %c0_i32, %c0_i32_0 : i32, i32
  }
  func.func @transform_7(%arg0: i32) -> (i32, i32) {
    %c0_i32 = arith.constant 0 : i32
    %c0_i32_0 = arith.constant 0 : i32
    %c0_i32_1 = arith.constant 0 : i32
    return %c0_i32, %c0_i32_0 : i32, i32
  }
  func.func @transform_8(%arg0: i32) -> (i32, i32) {
    %c0_i32 = arith.constant 0 : i32
    %c0_i32_0 = arith.constant 0 : i32
    %c0_i32_1 = arith.constant 0 : i32
    return %c0_i32, %c0_i32_0 : i32, i32
  }
  func.func @transform_9(%arg0: i32) -> (i32, i32) {
    %c0_i32 = arith.constant 0 : i32
    %c0_i32_0 = arith.constant 0 : i32
    return %arg0, %c0_i32 : i32, i32
  }
}

</mosaic_0001>

<bundles_post_ra>
// kernel: tpu_custom_call.1
= control target key start
LH: loop header
LB: loop body
LE: loop exit
PB: predicated region body
PF: predicated region fallthrough
CT: control target
= control target key end

     0   :  { %v746_v3 = vmov 0.0|0.0   ;;  %vm747_vm0 = vmmov 0   ;;  %v748_v8 = vmov 0.0   ;;  %vm133_vm1 = vcmask 261120   ;;  %s909_s0 = inlined_call_operand.vmem [shape: f32[2,48], index: 0, kind: input, shape index: {}]   ;;  %s910_s1 = inlined_call_operand.vmem [shape: f32[16,32], index: 1, kind: input, shape index: {}]   ;;  %s911_s2 = inlined_call_operand.vmem [shape: f32[48,32], index: 2, kind: input, shape index: {}]   ;;  %s912_s3 = inlined_call_operand.vmem [shape: f32[32,64], index: 3, kind: input, shape index: {}]   ;;  %s913_s4 = inlined_call_operand.vmem [shape: f32[32,32], index: 4, kind: input, shape index: {}]   ;;  %s914_s5 = inlined_call_operand.vmem [shape: f32[2,32], index: 5, kind: input, shape index: {}]   ;;  %s915_s6 = inlined_call_operand.vmem [shape: f32[1,64], index: 6, kind: input, shape index: {}]   ;;  %s916_s7 = inlined_call_operand.vmem [shape: f32[32,4], index: 7, kind: input, shape index: {}]   ;;  %s917_s8 = inlined_call_operand.vmem [shape: f32[4,32], index: 8, kind: input, shape index: {}]   ;;  %s918_s9 = inlined_call_operand.hbm [shape: f32[2,32], index: 9, kind: output, shape index: {}]  }
   0x1   :  { %v34_v0 = vld [vmem:[%s911_s2] sm:$0xff]  ;;  %v35_v1 = vld [vmem:[%s911_s2 + $0x8] sm:$0xff]  ;;  %v36_v2 = vld [vmem:[%s911_s2 + $0x10] sm:$0xff]  ;;  %677 = vmatprep.subr.bf16.mxu0 %v746_v3  ;;  %636 = vmatprep.mubr.msk.f32.mxu0 %vm747_vm0, %v748_v8 }
   0x2   :  { %v678_v4 = vpack.c.bf16 %v35_v1, %v34_v0  ;;  %v37_v5 = vld [vmem:[%s911_s2 + $0x18] sm:$0xff]  ;;  %v122_v6 = vld [vmem:[%s912_s3] sm:$0xff]  ;;  %v123_v7 = vld [vmem:[%s912_s3 + $0x8] sm:$0xff] }
   0x3   :  { %v686_v9 = vpack.c.bf16 %v123_v7, %v122_v6  ;;  %v124_v10 = vld [vmem:[%s912_s3 + $0x10] sm:$0xff]  ;;  %v681_v11 = vpack.c.bf16 %v37_v5, %v36_v2  ;;  %v125_v12 = vld [vmem:[%s912_s3 + $0x18] sm:$0xff]  ;;  %v120_v13 = vld [vmem:[%s910_s1] sm:$0xff] }
   0x4   :  { %679 = vmatpush3.bf16.msra.mxu0 %v678_v4  ;;  %v38_v14 = vld [vmem:[%s911_s2 + $0x20] sm:$0xff]  ;;  %v39_v15 = vld [vmem:[%s911_s2 + $0x28] sm:$0xff]  ;;  %v690_v16 = vpack.c.bf16 %v125_v12, %v124_v10 }
   0x5   :  { %680 = vmatprep.subr.bf16.mxu0 %v746_v3  ;;  %687 = vmatprep.subr.bf16.mxu1 %v686_v9 }
   0x6   :  { %14 = vsyncpa [#allocation3], 0  ;;  %689 = vmatpush3.bf16.msra.mxu1 %v686_v9  ;;  %647 = vmatprep.mubr.msk.f32.mxu1 %vm133_vm1, %v120_v13  ;;  %v684_v17 = vpack.c.bf16 %v39_v15, %v38_v14  ;;  %v121_v18 = vld [vmem:[%s910_s1 + $0x8] sm:$0xff]  ;;  %v33_v19 = vld [vmem:[%s909_s0] sm:$0x3]  ;;  %vm45_vm2 = vcmask 392192   ;;  %v219_v28 = vlaneseq }
   0x7   :  { %691 = vmatprep.subr.bf16.mxu1 %v690_v16  ;;  %v250_v20 = vld [vmem:[%s916_s7] sm:$0xff]  ;;  %v251_v21 = vld [vmem:[%s916_s7 + $0x8] sm:$0xff]  ;;  %v252_v23 = vld [vmem:[%s916_s7 + $0x10] sm:$0xff]  ;;  %v749_v26 = vmov 1966171168   ;;  %vm381_vm3 = vcmask 1043456  }
   0x8   :  { %682 = vmatpush3.bf16.msra.mxu0 %v681_v11  ;;  %v694_v22 = vpack.c.bf16 %v251_v21, %v250_v20  ;;  %v253_v24 = vld [vmem:[%s916_s7 + $0x18] sm:$0xff]  ;;  %v217_v27 = vunpack.c.l.s4 %v749_v26  ;;  %v220_v30 = vshrl.u32 %v219_v28, 7  ;;  %v587_v31 = vld [vmem:[%s915_s6] ss:$0 sm:$0xff]  ;;  %s750_s7 = smov 96   ;;  %vm335_vm4 = vcmask 31744  }
   0x9   :  { %683 = vmatprep.subr.bf16.mxu0 %v746_v3  ;;  %v698_v25 = vpack.c.bf16 %v253_v24, %v252_v23  ;;  %v585_v32 = vld [vmem:[%s914_s5] ss:$0 sm:$0xff]  ;;  %vm495_vm5 = vcmask 1041409   ;;  %s751_s3 = smov [#allocation2]   ;;  %vm569_vm6 = vcmask 254976  }
   0xa   :  { %693 = vmatpush3.bf16.msra.mxu1 %v690_v16  ;;  %v218_v29 = vunpack.c.0.s8 %v217_v27  ;;  %v240_v43 = vsub.s32 0, %v220_v30  ;;  %v374_v51 = vld [vmem:[%s917_s8] sm:$0xf]  ;;  %s577_s10 = sshll.u32 %s751_s3, 4  ;;  %s578_s10 = int_to_ptr.vmem [resolvable:$true] %s577_s10 }
   0xb   :  { %695 = vmatprep.subr.bf16.mxu1 %v694_v22  ;;  %s722_s11 = scalar_lea.vmem %s578_s10, 32  ;;  %p727_p1 = scmp.lt.s32.totalorder %s578_s10, %s578_s10 }
   0xc   :  { %685 = vmatpush3.bf16.msra.mxu0 %v684_v17  ;;  %v221_v38 = vsub.s32 %v218_v29, %v220_v30  ;;  %v484_v29 = vld [vmem:[%s913_s4] sm:$0xff]  ;;  %v485_v30 = vld [vmem:[%s913_s4 + $0x8] sm:$0xff]  ;;  %p723_p0 = scmp.ne.s32.totalorder %s578_s10, %s722_s11  ;;  %p728_p2 = scmp.lt.s32.totalorder %s722_s11, %s722_s11 }
   0xd   :  { %648 = vmatmul.mubr.msk.f32.vlgmr.msra.gmra.mrb[0].mxu1 %vm133_vm1, %v121_v18  ;;  %702 = vmatprep.subr.bf16.mxu0 %v746_v3 }
   0xe   :  { %697 = vmatpush3.bf16.msra.mxu1 %v694_v22  ;;  %p729_p3 = por %p728_p2, %p727_p1 }
   0xf   :  { %637 = vmatmul.mubr.msk.f32.vlgmr.msra.gmra.mrb[0].mxu0 %vm45_vm2, %v33_v19  ;;  %699 = vmatprep.subr.bf16.mxu1 %v698_v25 }
  0x10   :  { %674 = vmatprep.mubr.msk.f32.mxu0 %vm747_vm0, %v748_v8  ;;  %p730_p4 = pnand %p729_p3, %p723_p0 }
  0x12   :  { %701 = vmatpush3.bf16.msra.mxu1 %v698_v25 }
  0x13   :  { %661 = vmatprep.subr.msk.mxu1 %vm381_vm3, %v374_v51 }
  0xe0   :  { %v649_v33 = vpop.f32.mrb[0].mxu1 }
  0xe1   :  { %v206_v34 = vpop.f32.mrb[1].mxu1  ;;  %v212_v40 = vadd.f32 %v649_v33, %v587_v31  ;;  %v487_v33 = vld [vmem:[%s913_s4 + $0x18] sm:$0xff] }
  0xe2   :  { %v115_v35 = vpop.f32.mrb[0].mxu0  ;;  %v207_v36 = vadd.f32 %v587_v31, %v206_v34  ;;  %v703_v31 = vpack.c.bf16 %v485_v30, %v484_v29 }
  0xe3   :  { %v116_v37 = vadd.f32 %v585_v32, %v115_v35  ;;  %v638_v39 = vpop.f32.mrb[1].mxu0  ;;  %v486_v32 = vld [vmem:[%s913_s4 + $0x10] sm:$0xff] }
  0xe4   :  { %462 = vrot.lane.b32.xlu0 %v207_v36, %s750_s7  ;;  %704 = vmatpush3.bf16.msra.mxu0 %v703_v31  ;;  %v706_v34 = vpack.c.bf16 %v487_v33, %v486_v32 }
  0xe5   :  { %v119_v41 = vmul.f32 0.17677669, %v116_v37  ;;  %705 = vmatprep.subr.bf16.mxu0 %v746_v3 }
  0xe7   :  { %v222_v42 = vrot.slane %v119_v41, %v221_v38 }
  0xe8   :  { %464 = vrot.lane.b32.xlu0 %v212_v40, %s750_s7  ;;  %707 = vmatpush3.bf16.msra.mxu0 %v706_v34 }
  0xe9   :  { %v223_v44 = vcombine.high %v222_v42, %v222_v42  ;;  %v230_v45 = vrot.slane %v222_v42, %v221_v38 }
  0xeb   :  { %v237_v46 = vrot.slane %v223_v44, %v221_v38  ;;  %v241_v47 = vrot.slane %v230_v45, %v240_v43 }
  0xed   :  { %v245_v48 = vrot.slane %v237_v46, %v240_v43  ;;  %v248_v49 = vmul.f32 %v241_v47, %v207_v36 }
  0xef   :  { %v249_v50 = vmul.f32 %v245_v48, %v212_v40  ;;  %658 = vmatprep.mubr.msk.f32.mxu1 %vm133_vm1, %v248_v49 }
  0xf1   :  { %659 = vmatmul.mubr.msk.f32.vlgmr.msra.gmra.mrb[2].mxu1 %vm133_vm1, %v249_v50 }
  0xf2   :  { %662 = vmatpush3.msk.msra.mxu1 %vm381_vm3, %v374_v51 }
 0x156   :  { %v463_v35 = vpop.permute.xlu0 %462 }
 0x15a   :  { %v465_v36 = vpop.permute.xlu0 %464 }
 0x1c4   :  { %v660_v52 = vpop.f32.mrb[2].mxu1 }
 0x1c5   :  { %v343_v53 = vsel %vm335_vm4, %v660_v52, -inf  ;;  %v326_v54 = vpop.f32.mrb[3].mxu1 }
 0x1c6   :  { %v344_v55 = vrot.slane %v343_v53, 4  ;;  %v336_v56 = vsel %vm335_vm4, %v326_v54, -inf }
 0x1c7   :  { %v337_v57 = vrot.slane %v336_v56, 4 }
 0x1c8   :  { %v345_v58 = vmax.f32 %v343_v53, %v344_v55  ;;  %v595_v55 = vld [vmem:[%s914_s5 + $0x1] ss:$0 sm:$0xff] }
 0x1c9   :  { %v338_v59 = vmax.f32 %v336_v56, %v337_v57 }
 0x1ca   :  { %v346_v60 = vrot.slane %v345_v58, 2 }
 0x1cb   :  { %v339_v61 = vrot.slane %v338_v59, 2 }
 0x1cc   :  { %v347_v62 = vmax.f32 %v345_v58, %v346_v60 }
 0x1cd   :  { %v340_v63 = vmax.f32 %v338_v59, %v339_v61 }
 0x1ce   :  { %v348_v0 = vrot.slane %v347_v62, 1 }
 0x1cf   :  { %v341_v1 = vrot.slane %v340_v63, 1 }
 0x1d0   :  { %v349_v2 = vmax.f32 %v347_v62, %v348_v0 }
 0x1d1   :  { %v342_v4 = vmax.f32 %v340_v63, %v341_v1 }
 0x1d2   :  { %v351_v5 = vsub.f32 %v660_v52, %v349_v2 }
 0x1d3   :  { %v350_v6 = vsub.f32 %v326_v54, %v342_v4 }
 0x1d4   :  { %v354_v7 = vmul.f32 1.442695, %v351_v5 }
 0x1d5   :  { %v352_v8 = vmul.f32 1.442695, %v350_v6 }
 0x1d6   :  { %714 = vpow2.f32 %v354_v7 }
 0x1d7   :  { %716 = vpow2.f32 %v352_v8 }
 0x1e0   :  { %v715_v9 = vpop.eup %714 }
 0x1e1   :  { %v717_v10 = vpop.eup %716  ;;  %v363_v11 = vsel %vm335_vm4, %v715_v9, 0.0 }
 0x1e2   :  { %v364_v12 = vrot.slane %v363_v11, 4  ;;  %v356_v13 = vsel %vm335_vm4, %v717_v10, 0.0 }
 0x1e3   :  { %v357_v14 = vrot.slane %v356_v13, 4 }
 0x1e4   :  { %v365_v15 = vadd.f32 %v364_v12, %v363_v11 }
 0x1e5   :  { %v358_v16 = vadd.f32 %v357_v14, %v356_v13 }
 0x1e6   :  { %v366_v17 = vrot.slane %v365_v15, 2 }
 0x1e7   :  { %v359_v18 = vrot.slane %v358_v16, 2 }
 0x1e8   :  { %v367_v19 = vadd.f32 %v366_v17, %v365_v15 }
 0x1e9   :  { %v360_v20 = vadd.f32 %v359_v18, %v358_v16 }
 0x1ea   :  { %v368_v21 = vrot.slane %v367_v19, 1 }
 0x1eb   :  { %v361_v22 = vrot.slane %v360_v20, 1 }
 0x1ec   :  { %v369_v23 = vadd.f32 %v368_v21, %v367_v19 }
 0x1ed   :  { %v362_v24 = vadd.f32 %v361_v22, %v360_v20 }
 0x1ee   :  { %718 = vrcp.f32 %v369_v23 }
 0x1ef   :  { %720 = vrcp.f32 %v362_v24 }
 0x1f8   :  { %v719_v25 = vpop.eup %718 }
 0x1f9   :  { %v721_v26 = vpop.eup %720  ;;  %v373_v28 = vmul.f32 %v719_v25, %v715_v9 }
 0x1fa   :  { %v371_v27 = vmul.f32 %v721_v26, %v717_v10 }
 0x1fc   :  { %663 = vmatprep.mubr.msk.f32.mxu1 %vm335_vm4, %v371_v27 }
 0x1fd   :  { %664 = vmatmul.mubr.msk.f32.vlgmr.msra.gmra.mrb[4].mxu1 %vm335_vm4, %v373_v28 }
 0x2d0   :  { %v665_v37 = vpop.f32.mrb[4].mxu1 }
 0x2d1   :  { %v469_v38 = vmul.f32 %v665_v37, %v465_v36  ;;  %v451_v39 = vpop.f32.mrb[5].mxu1 }
 0x2d2   :  { %v468_v40 = vmul.f32 %v463_v35, %v451_v39 }
 0x2d3   :  { %v477_v41 = vsel %vm133_vm1, %v469_v38, 0.0 }
 0x2d4   :  { %v478_v42 = vrot.slane %v477_v41, 4  ;;  %v470_v3 = vsel %vm133_vm1, %v468_v40, 0.0 }
 0x2d5   :  { %v471_v43 = vrot.slane %v470_v3, 4 }
 0x2d6   :  { %v479_v44 = vadd.f32 %v478_v42, %v477_v41 }
 0x2d7   :  { %v472_v45 = vadd.f32 %v471_v43, %v470_v3 }
 0x2d8   :  { %v480_v46 = vrot.slane %v479_v44, 2 }
 0x2d9   :  { %v473_v47 = vrot.slane %v472_v45, 2 }
 0x2da   :  { %v481_v48 = vadd.f32 %v480_v46, %v479_v44 }
 0x2db   :  { %v474_v49 = vadd.f32 %v473_v47, %v472_v45 }
 0x2dc   :  { %v482_v50 = vrot.slane %v481_v48, 1 }
 0x2dd   :  { %v475_v51 = vrot.slane %v474_v49, 1 }
 0x2de   :  { %v483_v52 = vadd.f32 %v482_v50, %v481_v48 }
 0x2df   :  { %v476_v53 = vadd.f32 %v475_v51, %v474_v49 }
 0x2e1   :  { %v496_v54 = vsel %vm495_vm5, %v483_v52, %v476_v53 }
 0x2e2   :  { %675 = vmatmul.mubr.msk.f32.vlgmr.msra.gmra.mrb[2].mxu0 %vm133_vm1, %v496_v54 }
 0x3b5   :  { %v565_v56 = vpop.f32.mrb[2].mxu0 }
 0x3b6   :  { %v566_v57 = vadd.f32 %v595_v55, %v565_v56  ;;  %v676_v58 = vpop.f32.mrb[3].mxu0 }
 0x3b8   :  { %570 = vst.msk [vmem:[#allocation2] sm:$0x3] %vm569_vm6, %v566_v57 }
 0x3b9   :  { %733 = shalt.err (!%p730_p4)
}
 0x3ba   :  { %s734_s13 = scalar_lea.hbm %s918_s9, 32 }
 0x3bb   :  { %p735_p5 = scmp.ne.s32.totalorder %s918_s9, %s734_s13  ;;  %p738_p6 = scmp.lt.u32.totalorder %s734_s13, %s918_s9 }
 0x3bd   :  { %p740_p7 = pnand %p738_p6, %p735_p5 }
 0x3bf   :  { %743 = shalt.err (!%p740_p7)
}
 0x3c0   :  { %580 = dma.vmem_to_hbm [thread:$0]  %s578_s10, 32, %s918_s9, [#allocation3]  }
 0x3c1   :  { %744 = dma.done.wait [#allocation3], 32  }
 0x3c2   :  { %745 = vsyncadd [#allocation3], 4294967264 }
 0x3c3   :  { %584 = vsyncpa [#allocation3], 1 }

</bundles_post_ra>
